<compile_context>
chip_gen: v5e
topology: v5e:2x2
jax: 0.10.0
libtpu: 0.0.40
codegen_flags: <defaults>
</compile_context>

<pallas_src>
import functools
import math

import jax
import jax.numpy as jnp
import numpy as np
from jax.experimental import pallas as pl
from jax.experimental.pallas import tpu as pltpu


def _pos_kernel(wy_ref, wx_ref, ph_ref, ye_ref, xe_ref, o_ref):
    """pos[c, s] = sin(y_embed[s] * wy[c] + x_embed[s] * wx[c] + phase[c]).

    wy/wx/ph : (C, 1) per-channel constants (VMEM-resident across the grid)
               wy[c] = 1/dim_t for the y-half, 0 for the x-half (wx is the
               complement); phase[c] = 0 (sin) or pi/2 (cos).
    ye/xe    : (1, S) flattened row / column embeddings for this spatial tile.
    o        : (C, S) output tile (batch dim squeezed away by the BlockSpec).
    """
    arg = ye_ref[...] * wy_ref[...] + xe_ref[...] * wx_ref[...] + ph_ref[...]
    o_ref[...] = jnp.sin(arg)


def _pick_spatial_tile(hw, c, *, bytes_per_elem=4, target_bytes=2 << 20):
    """Largest multiple-of-128 divisor of hw whose (C, tile) f32 output block
    stays under ~2 MiB; falls back to the full extent when hw is not
    128-aligned (full-extent blocks are always legal)."""
    if hw % 128 != 0:
        return hw
    max_tile = max(128, (target_bytes // (c * bytes_per_elem)) // 128 * 128)
    best = 128
    t = 256
    while t <= hw and t <= max_tile:
        if hw % t == 0:
            best = t
        t += 128
    return best


@functools.partial(jax.jit,
                   static_argnames=("num_pos_feats", "temperature",
                                    "normalize", "scale"))
def position_embedding_sine(tensors, mask, *, num_pos_feats=64,
                            temperature=10000.0, normalize=False, scale=None):
    """JAX/Pallas port of PositionEmbeddingSine.forward(tensors, mask).

    tensors: (B, C, H, W) feature map — as in the PyTorch module its values are
             not used, only the mask determines the encoding.
    mask:    (B, H, W) bool, True = padded position.
    returns: (B, 2*num_pos_feats, H, W) float32 positional encoding.
    """
    del tensors  # values unused, exactly like the PyTorch module
    if scale is not None and normalize is False:
        raise ValueError('normalize should be True if scale is passed')
    if scale is None:
        scale = 2.0 * math.pi

    B, H, W = mask.shape
    P = int(num_pos_feats)
    C = 2 * P
    HW = H * W

    # ---- O(B*H*W) preprocessing in XLA (mask cumsum + optional normalize) ----
    # TODO(synk): the cumsum over the (B, H, W) mask stays in the XLA wrapper;
    # it is negligible next to the O(B*C*H*W) kernel and has no clean tiled
    # form once the spatial axis is flattened for lane density.
    not_mask = (~mask).astype(jnp.float32)
    y_embed = jnp.cumsum(not_mask, axis=1)
    x_embed = jnp.cumsum(not_mask, axis=2)
    if normalize:
        eps = 1e-6
        y_embed = y_embed / (y_embed[:, -1:, :] + eps) * scale
        x_embed = x_embed / (x_embed[:, :, -1:] + eps) * scale
    ye = y_embed.reshape(B, 1, HW)
    xe = x_embed.reshape(B, 1, HW)

    # ---- per-channel constants, computed once on the host at trace time ----
    i = np.arange(P, dtype=np.float64)
    inv_dim_t = 1.0 / (float(temperature) ** (2.0 * np.floor(i / 2.0) / P))
    phase = np.where(i % 2 == 0, 0.0, np.pi / 2.0)   # cos(x) = sin(x + pi/2)
    wy = np.concatenate([inv_dim_t, np.zeros(P)])[:, None].astype(np.float32)
    wx = np.concatenate([np.zeros(P), inv_dim_t])[:, None].astype(np.float32)
    ph = np.concatenate([phase, phase])[:, None].astype(np.float32)

    S = _pick_spatial_tile(HW, C)
    grid = (B, HW // S)

    pos_flat = pl.pallas_call(
        _pos_kernel,
        out_shape=jax.ShapeDtypeStruct((B, C, HW), jnp.float32),
        grid=grid,
        in_specs=[
            pl.BlockSpec((C, 1), lambda b, s: (0, 0)),           # wy (resident)
            pl.BlockSpec((C, 1), lambda b, s: (0, 0)),           # wx (resident)
            pl.BlockSpec((C, 1), lambda b, s: (0, 0)),           # phase (resident)
            pl.BlockSpec((None, 1, S), lambda b, s: (b, 0, s)),  # y_embed tile
            pl.BlockSpec((None, 1, S), lambda b, s: (b, 0, s)),  # x_embed tile
        ],
        out_specs=pl.BlockSpec((None, C, S), lambda b, s: (b, 0, s)),
        compiler_params=pltpu.CompilerParams(
            dimension_semantics=("parallel", "parallel")),
    )(jnp.asarray(wy), jnp.asarray(wx), jnp.asarray(ph), ye, xe)

    return pos_flat.reshape(B, C, H, W)


def _reference(mask, *, num_pos_feats, temperature=10000.0, normalize=False,
               scale=None):
    """Pure-JAX transcription of the PyTorch forward, for verification."""
    if scale is None:
        scale = 2.0 * math.pi
    B, H, W = mask.shape
    not_mask = (~mask).astype(jnp.float32)
    y_embed = jnp.cumsum(not_mask, axis=1)
    x_embed = jnp.cumsum(not_mask, axis=2)
    if normalize:
        eps = 1e-6
        y_embed = y_embed / (y_embed[:, -1:, :] + eps) * scale
        x_embed = x_embed / (x_embed[:, :, -1:] + eps) * scale
    dim_t = jnp.arange(num_pos_feats, dtype=jnp.float32)
    dim_t = temperature ** (2.0 * jnp.floor(dim_t / 2.0) / num_pos_feats)
    pos_x = x_embed[:, :, :, None] / dim_t
    pos_y = y_embed[:, :, :, None] / dim_t
    pos_x = jnp.stack((jnp.sin(pos_x[:, :, :, 0::2]),
                       jnp.cos(pos_x[:, :, :, 1::2])),
                      axis=4).reshape(B, H, W, -1)
    pos_y = jnp.stack((jnp.sin(pos_y[:, :, :, 0::2]),
                       jnp.cos(pos_y[:, :, :, 1::2])),
                      axis=4).reshape(B, H, W, -1)
    pos = jnp.concatenate((pos_y, pos_x), axis=3).transpose(0, 3, 1, 2)
    return pos


if __name__ == "__main__":
    key = jax.random.PRNGKey(0)
    B, num_pos_feats, H, W = 2, 4, 16, 16
    C = 2 * num_pos_feats
    x = jax.random.normal(key, (B, C, H, W), dtype=jnp.float32)

    # Deterministic padding-style mask (True = padded), like DETR batching.
    mask = jnp.zeros((B, H, W), dtype=bool)
    mask = mask.at[1, :, W - 5:].set(True)
    mask = mask.at[1, H - 3:, :].set(True)

    for kwargs in (
        dict(num_pos_feats=num_pos_feats, temperature=10000.0,
             normalize=False, scale=None),
        dict(num_pos_feats=num_pos_feats, temperature=10000.0,
             normalize=True, scale=None),
    ):
        out = position_embedding_sine(x, mask, **kwargs)
        out = jax.block_until_ready(out)
        ref = _reference(mask, **kwargs)
        np.testing.assert_allclose(np.asarray(out), np.asarray(ref),
                                   rtol=1e-5, atol=2e-5)

    print("KERNEL_OK")
</pallas_src>

<mosaic_0001>
module attributes {stable_mosaic.version = 11 : i64} {
  func.func @_pos_kernel(%arg0: i32, %arg1: i32, %arg2: memref<8x1xf32, #tpu.memory_space<vmem>>, %arg3: memref<8x1xf32, #tpu.memory_space<vmem>>, %arg4: memref<8x1xf32, #tpu.memory_space<vmem>>, %arg5: memref<1x1x256xf32, #tpu.memory_space<vmem>>, %arg6: memref<1x1x256xf32, #tpu.memory_space<vmem>>, %arg7: memref<1x8x256xf32, #tpu.memory_space<vmem>>) attributes {dimension_semantics = [#tpu.dimension_semantics<parallel>, #tpu.dimension_semantics<parallel>], iteration_bounds = array<i64: 2, 1>, scalar_prefetch = 0 : i64, scratch_operands = 0 : i64, tpu.core_type = #tpu.core_type<tc>, window_params = [{pipeline_mode = #tpu.pipeline_mode<synchronous>, transform_indices = @transform_0, window_bounds = array<i64: 8, 1>}, {pipeline_mode = #tpu.pipeline_mode<synchronous>, transform_indices = @transform_1, window_bounds = array<i64: 8, 1>}, {pipeline_mode = #tpu.pipeline_mode<synchronous>, transform_indices = @transform_2, window_bounds = array<i64: 8, 1>}, {transform_indices = @transform_3, window_bounds = array<i64: 1, 1, 256>}, {transform_indices = @transform_4, window_bounds = array<i64: 1, 1, 256>}, {transform_indices = @transform_5, window_bounds = array<i64: 1, 8, 256>}]} {
    %c0 = arith.constant 0 : index
    %c0_0 = arith.constant 0 : index
    %c0_1 = arith.constant 0 : index
    %0 = vector.load %arg5[%c0, %c0_0, %c0_1] : memref<1x1x256xf32, #tpu.memory_space<vmem>>, vector<1x1x256xf32>
    %1 = vector.shape_cast %0 : vector<1x1x256xf32> to vector<1x256xf32>
    %c0_2 = arith.constant 0 : index
    %c0_3 = arith.constant 0 : index
    %2 = vector.load %arg2[%c0_2, %c0_3] : memref<8x1xf32, #tpu.memory_space<vmem>>, vector<8x1xf32>
    %3 = vector.broadcast %1 : vector<1x256xf32> to vector<8x256xf32>
    %4 = vector.broadcast %2 : vector<8x1xf32> to vector<8x256xf32>
    %5 = arith.mulf %3, %4 : vector<8x256xf32>
    %c0_4 = arith.constant 0 : index
    %c0_5 = arith.constant 0 : index
    %c0_6 = arith.constant 0 : index
    %6 = vector.load %arg6[%c0_4, %c0_5, %c0_6] : memref<1x1x256xf32, #tpu.memory_space<vmem>>, vector<1x1x256xf32>
    %7 = vector.shape_cast %6 : vector<1x1x256xf32> to vector<1x256xf32>
    %c0_7 = arith.constant 0 : index
    %c0_8 = arith.constant 0 : index
    %8 = vector.load %arg3[%c0_7, %c0_8] : memref<8x1xf32, #tpu.memory_space<vmem>>, vector<8x1xf32>
    %9 = vector.broadcast %7 : vector<1x256xf32> to vector<8x256xf32>
    %10 = vector.broadcast %8 : vector<8x1xf32> to vector<8x256xf32>
    %11 = arith.mulf %9, %10 : vector<8x256xf32>
    %12 = arith.addf %5, %11 : vector<8x256xf32>
    %c0_9 = arith.constant 0 : index
    %c0_10 = arith.constant 0 : index
    %13 = vector.load %arg4[%c0_9, %c0_10] : memref<8x1xf32, #tpu.memory_space<vmem>>, vector<8x1xf32>
    %14 = vector.broadcast %13 : vector<8x1xf32> to vector<8x256xf32>
    %15 = arith.addf %12, %14 : vector<8x256xf32>
    %16 = math.sin %15 : vector<8x256xf32>
    %c0_11 = arith.constant 0 : index
    %c0_12 = arith.constant 0 : index
    %c0_13 = arith.constant 0 : index
    %17 = vector.load %arg7[%c0_11, %c0_12, %c0_13] : memref<1x8x256xf32, #tpu.memory_space<vmem>>, vector<1x8x256xf32>
    %18 = vector.shape_cast %17 : vector<1x8x256xf32> to vector<8x256xf32>
    %19 = vector.shape_cast %16 : vector<8x256xf32> to vector<1x8x256xf32>
    tpu.vector_store %arg7[%c0_11, %c0_12, %c0_13], %19 {strides = array<i32>} : memref<1x8x256xf32, #tpu.memory_space<vmem>>, vector<1x8x256xf32>,
    return
  }
  func.func @transform_0(%arg0: i32, %arg1: i32) -> (i32, i32) {
    %c0_i32 = arith.constant 0 : i32
    %c0_i32_0 = arith.constant 0 : i32
    %c0_i32_1 = arith.constant 0 : i32
    return %c0_i32, %c0_i32_0 : i32, i32
  }
  func.func @transform_1(%arg0: i32, %arg1: i32) -> (i32, i32) {
    %c0_i32 = arith.constant 0 : i32
    %c0_i32_0 = arith.constant 0 : i32
    %c0_i32_1 = arith.constant 0 : i32
    return %c0_i32, %c0_i32_0 : i32, i32
  }
  func.func @transform_2(%arg0: i32, %arg1: i32) -> (i32, i32) {
    %c0_i32 = arith.constant 0 : i32
    %c0_i32_0 = arith.constant 0 : i32
    %c0_i32_1 = arith.constant 0 : i32
    return %c0_i32, %c0_i32_0 : i32, i32
  }
  func.func @transform_3(%arg0: i32, %arg1: i32) -> (i32, i32, i32) {
    %c0_i32 = arith.constant 0 : i32
    %c0_i32_0 = arith.constant 0 : i32
    return %arg0, %c0_i32, %arg1 : i32, i32, i32
  }
  func.func @transform_4(%arg0: i32, %arg1: i32) -> (i32, i32, i32) {
    %c0_i32 = arith.constant 0 : i32
    %c0_i32_0 = arith.constant 0 : i32
    return %arg0, %c0_i32, %arg1 : i32, i32, i32
  }
  func.func @transform_5(%arg0: i32, %arg1: i32) -> (i32, i32, i32) {
    %c0_i32 = arith.constant 0 : i32
    %c0_i32_0 = arith.constant 0 : i32
    return %arg0, %c0_i32, %arg1 : i32, i32, i32
  }
}

</mosaic_0001>

<bundles_post_ra>
// kernel: position_embedding_sine.1
= control target key start
LH: loop header
LB: loop body
LE: loop exit
PB: predicated region body
PF: predicated region fallthrough
CT: control target
= control target key end

     0   :  { %s855_s18 = smov 0   ;;  %s857_s19 = smov 0   ;;  %s1092_s0 = inlined_call_operand.vmem [shape: f32[8,1], index: 0, kind: input, shape index: {}]   ;;  %s1093_s1 = inlined_call_operand.vmem [shape: f32[8,1], index: 1, kind: input, shape index: {}]   ;;  %s1094_s2 = inlined_call_operand.vmem [shape: f32[8,1], index: 2, kind: input, shape index: {}]   ;;  %s1095_s3 = inlined_call_operand.vmem [shape: f32[2,1,256], index: 3, kind: input, shape index: {}]   ;;  %s1096_s4 = inlined_call_operand.vmem [shape: f32[2,1,256], index: 4, kind: input, shape index: {}]   ;;  %s1097_s5 = inlined_call_operand.vmem [shape: f32[2,8,256], index: 5, kind: output, shape index: {}]  }
   0x1   :  { %s859_s20 = smov 0  }
   0x2 LB: > { %s27_s21 = sadd.s32 1, %s812_s19  ;;  %p747_p0 = scmp.ge.s32.totalorder %s816_s20, 1  ;;  %s816_s20 = sphi %s859_s20, %s15_s20   ;;  %s812_s19 = sphi %s857_s19, %s1103_s19   ;;  %s808_s18 = sphi %s855_s18, %s1102_s18  }
   0x3   : > { %p29_p1 = scmp.ge.s32.totalorder %s27_s21, 2  ;;  %p223_p2 = scmp.lt.s32.totalorder %s816_s20, 3 }
   0x5   : > { %s1105_s21 = smov (%p29_p1, %s27_s21), 0  ;;  %p224_p3 = pnand %p747_p0, %p223_p2 }
   0x6   : > { %p267_p4 = scmp.lt.s32.totalorder (!%p224_p3), %s808_s18, 1 }
   0x7   : > { %227 = sbr.rel (%p224_p3) target bundleno = 257 (0x101), region = 40 }
   0xc   : > { %v295_v0 = vld [vmem:[%s1092_s0] sm:$0xff]  ;;  %v818_v2 = vmov 0   ;;  %s1107_s18 = smov (!%p267_p4, %s808_s18), 1  ;;  %v819_v44 = vmov 683565275  }
   0xd   : > { %v324_v1 = vld [vmem:[%s1094_s2] sm:$0xff]  ;;  %792 = vset.pattern.permute.xlu0 %v818_v2  ;;  %793 = vset.pattern.permute.xlu1 %v818_v2  ;;  %s748_s28 = sshll.u32 %s1107_s18, 1  ;;  %v820_v46 = vmov 2475754826   ;;  %v821_v50 = vmov 2131351028  }
   0xe   : > { %303 = vperm.xlu0 %792, %v295_v0   ;;  %327 = vperm.xlu1 %793, %v324_v1   ;;  %v309_v3 = vld [vmem:[%s1093_s1] sm:$0xff]  ;;  %s273_s6 = scalar_lea.vmem %s1095_s3, %s748_s28  ;;  %s282_s9 = scalar_lea.vmem %s1096_s4, %s748_s28  ;;  %v822_v53 = vmov 2102212464   ;;  %v823_v56 = vmov 920167782  }
   0xf   : > { %v294_v5 = vld [vmem:[%s273_s6] sm:$0x3]  ;;  %v824_v59 = vmov 1326507024   ;;  %s760_s10 = sshll.u32 %s1107_s18, 4 }
  0x10   : > { %v308_v6 = vld [vmem:[%s282_s9] sm:$0x3]  ;;  %v297_v7 = vperm.slane %v294_v5, 0  ;;  %v298_v8 = vperm.slane %v294_v5, 1  ;;  %s1068_s13 = scalar_lea.vmem %s1097_s5, %s760_s10 }
  0x11   : > { %v311_v9 = vperm.slane %v308_v6, 0  ;;  %v312_v10 = vperm.slane %v308_v6, 1 }
  0x16   : > { %317 = vperm.xlu0 %792, %v309_v3  }
  0x80   : > { %v304_v4 = vpop.permute.xlu0 %303  ;;  %v328_v16 = vpop.permute.xlu1 %327 }
  0x81   : > { %v306_v12 = vmul.f32 %v304_v4, %v297_v7  ;;  %v307_v13 = vmul.f32 %v304_v4, %v298_v8 }
  0x88   : > { %v318_v11 = vpop.permute.xlu0 %317 }
  0x89   : > { %v320_v14 = vmul.f32 %v318_v11, %v311_v9  ;;  %v321_v15 = vmul.f32 %v318_v11, %v312_v10 }
  0x8b   : > { %v322_v17 = vadd.f32 %v320_v14, %v306_v12  ;;  %v323_v18 = vadd.f32 %v321_v15, %v307_v13 }
  0x8d   : > { %v893_v19 = vadd.f32 %v328_v16, %v322_v17  ;;  %v895_v20 = vadd.f32 %v328_v16, %v323_v18 }
  0x8f   : > { %v332_v21 = vand.u32 2147483647, %v893_v19  ;;  %v335_v22 = vand.u32 2139095040, %v893_v19  ;;  %v487_v23 = vand.u32 2147483647, %v895_v20  ;;  %v490_v24 = vand.u32 2139095040, %v895_v20 }
  0x91   : > { %v336_v25 = vshrl.u32 %v335_v22, 23  ;;  %v339_v26 = vand.u32 8388607, %v332_v21  ;;  %v491_v27 = vshrl.u32 %v490_v24, 23  ;;  %v494_v30 = vand.u32 8388607, %v487_v23 }
  0x93   : > { %v752_v28 = vadd.s32 4294967169, %v336_v25  ;;  %v340_v29 = vor.u32 8388608, %v339_v26  ;;  %v755_v31 = vadd.s32 4294967169, %v491_v27  ;;  %v495_v35 = vor.u32 8388608, %v494_v30 }
  0x95   : > { %v342_v32 = vadd.s32 1, %v752_v28  ;;  %v497_v33 = vadd.s32 1, %v755_v31  ;;  %v905_v34 = vshll.u32 %v340_v29, 8  ;;  %v912_v42 = vshll.u32 %v495_v35, 8 }
  0x97   : > { %vm343_vm0 = vcmp.gt.s32.totalorder %v342_v32, 0  ;;  %vm498_vm1 = vcmp.gt.s32.totalorder %v497_v33, 0  ;;  %v908_v40 = vand.u32 65535, %v905_v34  ;;  %v382_v48 = vshrl.u32 %v905_v34, 16 }
  0x98   : > { %v344_v36 = vsel %vm343_vm0, %v342_v32, 0  ;;  %v499_v38 = vsel %vm498_vm1, %v497_v33, 0 }
  0x99   : > { %v346_v37 = vand.u32 31, %v344_v36  ;;  %v910_v41 = vand.u32 31, %v499_v38  ;;  %v914_v43 = vshrl.u32 %v344_v36, 5  ;;  %v952_v28 = vshrl.u32 %v499_v38, 5 }
  0x9b   : > { %v347_v39 = vsub.s32 32, %v346_v37  ;;  %v349_v45 = vshll.u32 %v819_v44, %v346_v37  ;;  %v352_v47 = vshll.u32 %v820_v46, %v346_v37  ;;  %v355_v52 = vshll.u32 %v821_v50, %v346_v37 }
  0x9c   : > { %v358_v55 = vshll.u32 %v822_v53, %v346_v37  ;;  %v361_v58 = vshll.u32 %v823_v56, %v346_v37  ;;  %v924_v0 = vsub.s32 32, %v910_v41  ;;  %vm364_vm2 = vcmp.lt.s32.totalorder %v914_v43, 1 }
  0x9d   : > { %v350_v49 = vshrl.u32 %v820_v46, %v347_v39  ;;  %v353_v51 = vshrl.u32 %v821_v50, %v347_v39  ;;  %v356_v54 = vshrl.u32 %v822_v53, %v347_v39  ;;  %v359_v57 = vshrl.u32 %v823_v56, %v347_v39 }
  0x9e   : > { %v362_v60 = vshrl.u32 %v824_v59, %v347_v39  ;;  %vm365_vm3 = vcmp.lt.s32.totalorder %v914_v43, 2  ;;  %v348_v4 = vshrl.u32 %v819_v44, %v347_v39  ;;  %vm367_vm4 = vcmp.lt.s32.totalorder %v914_v43, 4 }
  0x9f   : > { %v351_v61 = vor.u32 %v350_v49, %v349_v45  ;;  %v354_v62 = vor.u32 %v353_v51, %v352_v47  ;;  %v357_v63 = vor.u32 %v356_v54, %v355_v52  ;;  %v360_v1 = vor.u32 %v359_v57, %v358_v55 }
  0xa0   : > { %v363_v3 = vor.u32 %v362_v60, %v361_v58  ;;  %vm366_vm5 = vcmp.lt.s32.totalorder %v914_v43, 3  ;;  %v504_v9 = vshll.u32 %v819_v44, %v910_v41  ;;  %v505_v13 = vshrl.u32 %v820_v46, %v924_v0 }
  0xa1   : > { %v372_v5 = vsel %vm364_vm2, %v351_v61, %v354_v62  ;;  %v376_v6 = vsel %vm364_vm2, %v354_v62, %v357_v63  ;;  %v373_v7 = vsel %vm367_vm4, %v360_v1, 920167782  ;;  %v369_v10 = vsel %vm367_vm4, %v357_v63, 2102212464 }
  0xa2   : > { %v377_v8 = vsel %vm367_vm4, %v363_v3, 1326507024  ;;  %v374_v11 = vsel %vm366_vm5, %v357_v63, %v373_v7  ;;  %v507_v16 = vshll.u32 %v820_v46, %v910_v41  ;;  %v508_v17 = vshrl.u32 %v821_v50, %v924_v0 }
  0xa3   : > { %v378_v12 = vsel %vm366_vm5, %v360_v1, %v377_v8  ;;  %v375_v14 = vsel %vm365_vm3, %v372_v5, %v374_v11  ;;  %v368_v26 = vsel %vm364_vm2, %v348_v4, %v351_v61  ;;  %v370_v27 = vsel %vm366_vm5, %v354_v62, %v369_v10 }
  0xa4   : > { %v379_v15 = vsel %vm365_vm3, %v376_v6, %v378_v12  ;;  %v405_v24 = vand.u32 65535, %v375_v14  ;;  %v406_v25 = vshrl.u32 %v375_v14, 16  ;;  %v954_v29 = vor.u32 %v505_v13, %v504_v9 }
  0xa5   : > { %v383_v18 = vand.u32 65535, %v379_v15  ;;  %v384_v22 = vshrl.u32 %v379_v15, 16  ;;  %v957_v32 = vor.u32 %v508_v17, %v507_v16  ;;  %v511_v33 = vshrl.u32 %v822_v53, %v924_v0 }
  0xa6   : > { %v408_v36 = vmul.u32 %v406_v25, %v908_v40  ;;  %v409_v37 = vmul.u32 %v405_v24, %v382_v48  ;;  %v510_v39 = vshll.u32 %v821_v50, %v910_v41  ;;  %v407_v46 = vmul.u32 %v405_v24, %v908_v40 }
  0xa7   : > { %v386_v30 = vmul.u32 %v384_v22, %v908_v40  ;;  %v387_v31 = vmul.u32 %v383_v18, %v382_v48  ;;  %v385_v35 = vmul.u32 %v383_v18, %v908_v40  ;;  %v388_v45 = vmul.u32 %v384_v22, %v382_v48 }
  0xa8   : > { %v410_v47 = vmul.u32 %v406_v25, %v382_v48  ;;  %v411_v54 = vshll.u32 %v408_v36, 16  ;;  %v413_v57 = vshll.u32 %v409_v37, 16  ;;  %v965_v58 = vor.u32 %v511_v33, %v510_v39 }
  0xa9   : > { %v389_v38 = vshll.u32 %v386_v30, 16  ;;  %v390_v49 = vshrl.u32 %v386_v30, 16  ;;  %v391_v51 = vshll.u32 %v387_v31, 16  ;;  %v392_v52 = vshrl.u32 %v387_v31, 16 }
  0xaa   : > { %vm415_vm7 = vc.u32 %v407_v46, %v411_v54  ;;  %v417_v61 = vadd.s32 %v411_v54, %v407_v46  ;;  %v514_v50 = vshrl.u32 %v823_v56, %v924_v0  ;;  %v513_v48 = vshll.u32 %v822_v53, %v910_v41 }
  0xab   : > { %vm393_vm6 = vc.u32 %v385_v35, %v389_v38  ;;  %v395_v55 = vadd.s32 %v389_v38, %v385_v35  ;;  %v416_v40 = vsel %vm415_vm7, 1, %v818_v2  ;;  %v516_v3 = vshll.u32 %v823_v56, %v910_v41 }
  0xac   : > { %v394_v60 = vsel %vm393_vm6, 1, %v818_v2  ;;  %v418_v1 = vadd.s32 %v416_v40, %v410_v47  ;;  %vm419_vm9 = vc.u32 %v417_v61, %v413_v57  ;;  %v515_v6 = vor.u32 %v514_v50, %v513_v48 }
  0xad   : > { %v396_v62 = vadd.s32 %v394_v60, %v388_v45  ;;  %vm397_vm8 = vc.u32 %v395_v55, %v391_v51  ;;  %v420_v5 = vsel %vm419_vm9, 1, %v818_v2  ;;  %v517_v7 = vshrl.u32 %v824_v59, %v924_v0 }
  0xae   : > { %v398_v63 = vsel %vm397_vm8, 1, %v818_v2  ;;  %v412_v8 = vshrl.u32 %v408_v36, 16  ;;  %v414_v9 = vshrl.u32 %v409_v37, 16  ;;  %v979_v10 = vadd.s32 %v417_v61, %v413_v57 }
  0xaf   : > { %v400_v4 = vadd.s32 %v398_v63, %v396_v62  ;;  %v422_v11 = vadd.s32 %v420_v5, %v418_v1  ;;  %v518_v12 = vor.u32 %v517_v7, %v516_v3  ;;  %vm519_vm10 = vcmp.lt.s32.totalorder %v952_v28, 1 }
  0xb0   : > { %vm522_vm11 = vcmp.lt.s32.totalorder %v952_v28, 4  ;;  %vm521_vm12 = vcmp.lt.s32.totalorder %v952_v28, 3  ;;  %v527_v41 = vsel %vm519_vm10, %v954_v29, %v957_v32  ;;  %vm520_vm13 = vcmp.lt.s32.totalorder %v952_v28, 2 }
  0xb1   : > { %v401_v53 = vadd.s32 %v400_v4, %v390_v49  ;;  %v423_v13 = vadd.s32 %v422_v11, %v412_v8  ;;  %v528_v56 = vsel %vm522_vm11, %v515_v6, 920167782  ;;  %v531_v15 = vsel %vm519_vm10, %v957_v32, %v965_v58 }
  0xb2   : > { %v529_v14 = vsel %vm521_vm12, %v965_v58, %v528_v56  ;;  %v371_v16 = vsel %vm365_vm3, %v368_v26, %v370_v27  ;;  %v532_v22 = vsel %vm522_vm11, %v518_v12, 1326507024  ;;  %v536_v25 = vand.u32 65535, %v912_v42 }
  0xb3   : > { %v990_v59 = vadd.s32 %v401_v53, %v392_v52  ;;  %v424_v17 = vadd.s32 %v423_v13, %v414_v9  ;;  %v530_v18 = vsel %vm520_vm13, %v527_v41, %v529_v14  ;;  %v533_v24 = vsel %vm521_vm12, %v515_v6, %v532_v22 }
  0xb4   : > { %v560_v30 = vand.u32 65535, %v530_v18  ;;  %v534_v43 = vsel %vm520_vm13, %v531_v15, %v533_v24  ;;  %v537_v26 = vshrl.u32 %v912_v42, 16  ;;  %v561_v27 = vshrl.u32 %v530_v18, 16 }
  0xb5   : > { %vm427_vm14 = vc.u32 %v990_v59, %v979_v10  ;;  %v428_v31 = vadd.s32 1, %v424_v17  ;;  %v425_v33 = vmul.u32 %v905_v34, %v371_v16  ;;  %v538_v35 = vand.u32 65535, %v534_v43 }
  0xb6   : > { %v539_v36 = vshrl.u32 %v534_v43, 16  ;;  %v563_v39 = vmul.u32 %v561_v27, %v536_v25  ;;  %v564_v45 = vmul.u32 %v560_v30, %v537_v26  ;;  %v562_v49 = vmul.u32 %v560_v30, %v536_v25 }
  0xb7   : > { %v429_v37 = vsel %vm427_vm14, %v428_v31, %v424_v17  ;;  %v542_v47 = vmul.u32 %v538_v35, %v537_v26  ;;  %v565_v51 = vmul.u32 %v561_v27, %v537_v26  ;;  %v540_v55 = vmul.u32 %v538_v35, %v536_v25 }
  0xb8   : > { %v430_v38 = vadd.s32 %v429_v37, %v425_v33  ;;  %v541_v46 = vmul.u32 %v539_v36, %v536_v25  ;;  %v566_v52 = vshll.u32 %v563_v39, 16  ;;  %v543_v57 = vmul.u32 %v539_v36, %v537_v26 }
  0xb9   : > { %v546_v61 = vshll.u32 %v542_v47, 16  ;;  %v568_v50 = vshll.u32 %v564_v45, 16  ;;  %v524_v4 = vsel %vm522_vm11, %v965_v58, 2102212464  ;;  %v503_v6 = vshrl.u32 %v819_v44, %v924_v0 }
  0xba   : > { %v431_v54 = vadd.s32 536870912, %v430_v38  ;;  %v544_v60 = vshll.u32 %v541_v46, 16  ;;  %vm570_vm15 = vc.u32 %v562_v49, %v566_v52  ;;  %v572_v62 = vadd.s32 %v566_v52, %v562_v49 }
  0xbb   : > { %v571_v48 = vsel %vm570_vm15, 1, %v818_v2  ;;  %v545_v11 = vshrl.u32 %v541_v46, 16  ;;  %v523_v13 = vsel %vm519_vm10, %v503_v6, %v954_v29  ;;  %v525_v58 = vsel %vm521_vm12, %v957_v32, %v524_v4 }
  0xbc   : > { %v1015_v34 = vshrl.u32 %v431_v54, 30  ;;  %vm548_vm0 = vc.u32 %v540_v55, %v544_v60  ;;  %v550_v40 = vadd.s32 %v544_v60, %v540_v55  ;;  %v573_v1 = vadd.s32 %v571_v48, %v565_v51 }
  0xbd   : > { %v549_v63 = vsel %vm548_vm0, 1, %v818_v2  ;;  %vm574_vm1 = vc.u32 %v572_v62, %v568_v50  ;;  %v567_v41 = vshrl.u32 %v563_v39, 16  ;;  %v547_v44 = vshrl.u32 %v542_v47, 16 }
  0xbe   : > { %v433_v3 = vshll.u32 %v1015_v34, 30  ;;  %v551_v5 = vadd.s32 %v549_v63, %v543_v57  ;;  %vm552_vm2 = vc.u32 %v550_v40, %v546_v61  ;;  %v575_v8 = vsel %vm574_vm1, 1, %v818_v2 }
  0xbf   : > { %v553_v7 = vsel %vm552_vm2, 1, %v818_v2  ;;  %v577_v12 = vadd.s32 %v575_v8, %v573_v1  ;;  %v569_v14 = vshrl.u32 %v564_v45, 16  ;;  %v526_v18 = vsel %vm520_vm13, %v523_v13, %v525_v58 }
  0xc0   : > { %v434_v9 = vsub.s32 %v430_v38, %v433_v3  ;;  %v555_v53 = vadd.s32 %v553_v7, %v551_v5  ;;  %v576_v22 = vadd.s32 %v572_v62, %v568_v50  ;;  %v580_v32 = vmul.u32 %v912_v42, %v526_v18 }
  0xc1   : > { %v578_v15 = vadd.s32 %v577_v12, %v567_v41  ;;  %v426_v26 = vadd.s32 %v979_v10, %v990_v59  ;;  %vm334_vm7 = vcmp.lt.s32.totalorder %v893_v19, 0  ;;  %vm1044_vm8 = vcmp.le.f32.partialorder %v332_v21, 0.7853982 }
  0xc2   : > { %vm435_vm3 = vcmp.lt.s32.totalorder %v434_v9, 0  ;;  %v436_v56 = vsub.s32 0, %v434_v9  ;;  %v556_v0 = vadd.s32 %v555_v53, %v545_v11  ;;  %v456_v50 = vsub.s32 4, %v1015_v34 }
  0xc3   : > { %v579_v24 = vadd.s32 %v578_v15, %v569_v14  ;;  %vm1058_vm10 = vcmp.le.f32.partialorder %v487_v23, 0.7853982  ;;  %vm489_vm11 = vcmp.lt.s32.totalorder %v895_v20, 0  ;;  %vm475_vm15 = vweird.f32 %v893_v19 }
  0xc4   : > { %v437_v2 = vsel %vm435_vm3, %v436_v56, %v434_v9  ;;  %v557_v16 = vadd.s32 %v556_v0, %v547_v44  ;;  %v457_v21 = vsel %vm334_vm7, %v456_v50, %v1015_v34  ;;  %vm630_vm3 = vweird.f32 %v895_v20 }
  0xc5   : > { %v438_v17 = vclz %v437_v2  ;;  %v583_v25 = vadd.s32 1, %v579_v24  ;;  %v459_v53 = vsel %vm1044_vm8, 0, %v457_v21 }
  0xc6   : > { %vm582_vm4 = vc.u32 %v557_v16, %v576_v22  ;;  %v581_v3 = vadd.s32 %v576_v22, %v557_v16  ;;  %v476_v0 = vadd.s32 3, %v459_v53 }
  0xc7   : > { %v753_v29 = vadd.s32 4294967294, %v438_v17  ;;  %v584_v30 = vsel %vm582_vm4, %v583_v25, %v579_v24 }
  0xc8   : > { %v585_v43 = vadd.s32 %v584_v30, %v580_v32  ;;  %v477_v22 = vand.u32 3, %v476_v0 }
  0xc9   : > { %vm754_vm5 = vcmp.lt.s32.totalorder %v753_v29, 0 }
  0xca   : > { %v441_v31 = vsel %vm754_vm5, 0, %v753_v29  ;;  %v586_v35 = vadd.s32 536870912, %v585_v43  ;;  %vm478_vm12 = vcmp.lt.s32.totalorder %v477_v22, 2  ;;  %vm479_vm13 = vcmp.eq.s32.totalorder %v477_v22, 0 }
  0xcb   : > { %v442_v27 = vsub.s32 32, %v441_v31  ;;  %v446_v33 = vsub.s32 4294967266, %v441_v31  ;;  %v443_v36 = vshll.u32 %v434_v9, %v441_v31  ;;  %vm482_vm14 = vcmp.eq.s32.totalorder %v477_v22, 2 }
  0xcc   : > { %v1038_v39 = vshrl.u32 %v586_v35, 30 }
  0xcd   : > { %v444_v28 = vshrl.u32 %v426_v26, %v442_v27  ;;  %v447_v37 = vadd.s32 127, %v446_v33 }
  0xce   : > { %v588_v46 = vshll.u32 %v1038_v39, 30  ;;  %v611_v23 = vsub.s32 4, %v1038_v39 }
  0xcf   : > { %v445_v45 = vor.u32 %v444_v28, %v443_v36  ;;  %v448_v38 = vshll.u32 %v447_v37, 23 }
  0xd0   : > { %v589_v47 = vsub.s32 %v585_v43, %v588_v46 }
  0xd1   : > { %v449_v42 = vor.u32 4788187, %v448_v38  ;;  %v452_v51 = vcvt.s32.f32 %v445_v45  ;;  %v612_v38 = vsel %vm489_vm11, %v611_v23, %v1038_v39 }
  0xd2   : > { %vm590_vm6 = vcmp.lt.s32.totalorder %v589_v47, 0  ;;  %v591_v52 = vsub.s32 0, %v589_v47 }
  0xd3   : > { %v450_v49 = vand.u32 2147483647, %v449_v42 }
  0xd4   : > { %v592_v10 = vsel %vm590_vm6, %v591_v52, %v589_v47 }
  0xd5   : > { %v453_v54 = vmul.f32 %v452_v51, %v450_v49  ;;  %v593_v55 = vclz %v592_v10 }
  0xd7   : > { %v454_v59 = vxor.u32 2147483648, %v453_v54  ;;  %v756_v61 = vadd.s32 4294967294, %v593_v55 }
  0xd9   : > { %v455_v60 = vsel %vm334_vm7, %v454_v59, %v453_v54  ;;  %vm757_vm9 = vcmp.lt.s32.totalorder %v756_v61, 0 }
  0xda   : > { %v458_v62 = vsel %vm1044_vm8, %v893_v19, %v455_v60  ;;  %v596_v48 = vsel %vm757_vm9, 0, %v756_v61 }
  0xdb   : > { %v460_v40 = vmul.f32 %v458_v62, %v458_v62  ;;  %v597_v4 = vsub.s32 32, %v596_v48  ;;  %v601_v5 = vsub.s32 4294967266, %v596_v48  ;;  %v598_v9 = vshll.u32 %v589_v47, %v596_v48 }
  0xdc   : > { %v614_v47 = vsel %vm1058_vm10, 0, %v612_v38 }
  0xdd   : > { %v461_v63 = vmul.f32 -0.001358992, %v460_v40  ;;  %v468_v1 = vmul.f32 -0.00019511016, %v460_v40  ;;  %v599_v8 = vshrl.u32 %v581_v3, %v597_v4  ;;  %v602_v11 = vadd.s32 127, %v601_v5 }
  0xde   : > { %v631_v19 = vadd.s32 3, %v614_v47 }
  0xdf   : > { %v462_v6 = vadd.f32 0.041655596, %v461_v63  ;;  %v469_v7 = vadd.f32 0.008332121, %v468_v1  ;;  %v600_v58 = vor.u32 %v599_v8, %v598_v9  ;;  %v603_v41 = vshll.u32 %v602_v11, 23 }
  0xe0   : > { %v632_v60 = vand.u32 3, %v631_v19 }
  0xe1   : > { %v463_v12 = vmul.f32 %v462_v6, %v460_v40  ;;  %v470_v13 = vmul.f32 %v469_v7, %v460_v40  ;;  %v604_v14 = vor.u32 4788187, %v603_v41  ;;  %v607_v16 = vcvt.s32.f32 %v600_v58 }
  0xe2   : > { %vm634_vm0 = vcmp.eq.s32.totalorder %v632_v60, 0  ;;  %vm637_vm1 = vcmp.eq.s32.totalorder %v632_v60, 2  ;;  %vm633_vm2 = vcmp.lt.s32.totalorder %v632_v60, 2 }
  0xe3   : > { %v464_v56 = vadd.f32 -0.4999988, %v463_v12  ;;  %v471_v44 = vadd.f32 -0.16666654, %v470_v13  ;;  %v605_v2 = vand.u32 2147483647, %v604_v14 }
  0xe5   : > { %v465_v15 = vmul.f32 %v464_v56, %v460_v40  ;;  %v472_v34 = vmul.f32 %v471_v44, %v460_v40  ;;  %v608_v24 = vmul.f32 %v607_v16, %v605_v2 }
  0xe7   : > { %v466_v17 = vadd.f32 1.0, %v465_v15  ;;  %v473_v18 = vadd.f32 1.0, %v472_v34  ;;  %v609_v32 = vxor.u32 2147483648, %v608_v24 }
  0xe9   : > { %v474_v29 = vmul.f32 %v473_v18, %v458_v62  ;;  %v483_v25 = vxor.u32 2147483648, %v466_v17  ;;  %v610_v43 = vsel %vm489_vm11, %v609_v32, %v608_v24 }
  0xea   : > { %v613_v33 = vsel %vm1058_vm10, %v895_v20, %v610_v43 }
  0xeb   : > { %v480_v30 = vxor.u32 2147483648, %v474_v29  ;;  %v484_v27 = vsel %vm482_vm14, %v483_v25, %v474_v29  ;;  %v615_v36 = vmul.f32 %v613_v33, %v613_v33 }
  0xed   : > { %v481_v26 = vsel %vm479_vm13, %v466_v17, %v480_v30  ;;  %v616_v37 = vmul.f32 -0.001358992, %v615_v36  ;;  %v623_v45 = vmul.f32 -0.00019511016, %v615_v36 }
  0xee   : > { %v485_v35 = vsel %vm478_vm12, %v481_v26, %v484_v27 }
  0xef   : > { %v486_v28 = vsel %vm475_vm15, nan, %v485_v35  ;;  %v617_v46 = vadd.f32 0.041655596, %v616_v37  ;;  %v624_v42 = vadd.f32 0.008332121, %v623_v45 }
  0xf0   : > { %642 = vst [vmem:[%s1068_s13] sm:$0xff] %v486_v28 }
  0xf1   : > { %v618_v49 = vmul.f32 %v617_v46, %v615_v36  ;;  %v625_v51 = vmul.f32 %v624_v42, %v615_v36 }
  0xf3   : > { %v619_v52 = vadd.f32 -0.4999988, %v618_v49  ;;  %v626_v54 = vadd.f32 -0.16666654, %v625_v51 }
  0xf5   : > { %v620_v10 = vmul.f32 %v619_v52, %v615_v36  ;;  %v627_v59 = vmul.f32 %v626_v54, %v615_v36 }
  0xf7   : > { %v621_v55 = vadd.f32 1.0, %v620_v10  ;;  %v628_v57 = vadd.f32 1.0, %v627_v59 }
  0xf9   : > { %v629_v61 = vmul.f32 %v628_v57, %v613_v33  ;;  %v638_v50 = vxor.u32 2147483648, %v621_v55 }
  0xfb   : > { %v635_v62 = vxor.u32 2147483648, %v629_v61  ;;  %v639_v40 = vsel %vm637_vm1, %v638_v50, %v629_v61 }
  0xfd   : > { %v636_v39 = vsel %vm634_vm0, %v621_v55, %v635_v62 }
  0xfe   : > { %v640_v48 = vsel %vm633_vm2, %v636_v39, %v639_v40 }
  0xff   : > { %v641_v63 = vsel %vm630_vm3, nan, %v640_v48 }
 0x100   : > { %643 = vst [vmem:[%s1068_s13 + $0x8] sm:$0xff] %v641_v63 }
 0x101 PF: > { %s15_s20 = sadd.s32 1, %s816_s20   ;;  %s1102_s18 = smov %s812_s19 }
 0x102   : > { %p12_p5 = scmp.ge.s32.totalorder %s15_s20, 4   ;;  %s1103_s19 = smov %s1105_s21 }
 0x104   :  { %14 = sbr.rel (!%p12_p5) target bundleno = 2 (0x2), region = 73 }

</bundles_post_ra>
